<compile_context>
chip_gen: v7x
topology: tpu7x:2x2x1
jax: 0.10.0
libtpu: 0.0.40
codegen_flags: <defaults>
</compile_context>

<pallas_src>
import jax
import jax.numpy as jnp
from jax.experimental import pallas as pl
from jax.experimental.pallas import tpu as pltpu

_LANE = 128
_SUBLANE_BF16 = 16
_MAX_TILE_B = 512


def _round_up(x, m):
    return (x + m - 1) // m * m


def _critic_kernel(state_ref, w1_ref, b1_ref, w2_ref, b2_ref, wv_ref, bv_ref,
                   out_ref):
    # fc1 + tanh   (bf16 operands on the MXU, f32 accumulate / activation)
    h = jnp.dot(state_ref[...], w1_ref[...],
                preferred_element_type=jnp.float32) + b1_ref[...]
    h = jnp.tanh(h)
    # fc2 + tanh
    h = jnp.dot(h.astype(jnp.bfloat16), w2_ref[...],
                preferred_element_type=jnp.float32) + b2_ref[...]
    h = jnp.tanh(h)
    # value head — output padded to 128 lanes (column 0 is the real value),
    # so the store is a full unmasked lane-dense slab.
    out_ref[...] = jnp.dot(h.astype(jnp.bfloat16), wv_ref[...],
                           preferred_element_type=jnp.float32) + bv_ref[...]


def _pad2(x, rows, cols, dtype):
    out = jnp.zeros((rows, cols), dtype)
    return out.at[:x.shape[0], :x.shape[1]].set(x.astype(dtype))


@jax.jit
def critic_forward(state, params):
    """Critic forward pass. state: (batch, input_dims) f32 -> (batch, 1) f32."""
    w1, b1, w2, b2, wv, bv = params
    batch, input_dims = state.shape
    d1 = w1.shape[1]
    d2 = w2.shape[1]

    k_pad = _round_up(input_dims, _LANE)
    d1_pad = _round_up(d1, _LANE)
    d2_pad = _round_up(d2, _LANE)
    n_out_pad = _LANE                          # lane-dense value-head output

    # Batch tiling: small batches run in a single grid step (block == full
    # array); large batches are split into _MAX_TILE_B-row tiles.
    if batch <= _MAX_TILE_B:
        tile_b = _round_up(batch, _SUBLANE_BF16)
    else:
        tile_b = _MAX_TILE_B
    b_pad = _round_up(batch, tile_b)

    # Zero-pad + cast matmul operands to bf16 (MXU native); biases stay f32.
    state_p = _pad2(state, b_pad, k_pad, jnp.bfloat16)
    w1_p = _pad2(w1, k_pad, d1_pad, jnp.bfloat16)
    w2_p = _pad2(w2, d1_pad, d2_pad, jnp.bfloat16)
    wv_p = _pad2(wv, d2_pad, n_out_pad, jnp.bfloat16)
    b1_p = _pad2(b1.reshape(1, -1), 1, d1_pad, jnp.float32)
    b2_p = _pad2(b2.reshape(1, -1), 1, d2_pad, jnp.float32)
    bv_p = _pad2(bv.reshape(1, -1), 1, n_out_pad, jnp.float32)

    const = lambda shape: pl.BlockSpec(shape, lambda i: (0, 0))

    out_p = pl.pallas_call(
        _critic_kernel,
        out_shape=jax.ShapeDtypeStruct((b_pad, n_out_pad), jnp.float32),
        grid=(b_pad // tile_b,),
        in_specs=[
            pl.BlockSpec((tile_b, k_pad), lambda i: (i, 0)),   # state tile
            const((k_pad, d1_pad)),                            # w1 (resident)
            const((1, d1_pad)),                                # b1
            const((d1_pad, d2_pad)),                           # w2
            const((1, d2_pad)),                                # b2
            const((d2_pad, n_out_pad)),                        # wv
            const((1, n_out_pad)),                             # bv
        ],
        out_specs=pl.BlockSpec((tile_b, n_out_pad), lambda i: (i, 0)),
        compiler_params=pltpu.CompilerParams(
            dimension_semantics=("parallel",)),
    )(state_p, w1_p, b1_p, w2_p, b2_p, wv_p, bv_p)

    return out_p[:batch, :1]


def init_params(key, input_dims, fc1, fc2):
    """Deterministic synthetic parameters (PyTorch Linear shapes, transposed)."""
    ks = jax.random.split(key, 6)

    def lin(kw, kb, d_in, d_out):
        bound = 1.0 / jnp.sqrt(d_in)
        w = jax.random.uniform(kw, (d_in, d_out), jnp.float32, -bound, bound)
        b = jax.random.uniform(kb, (d_out,), jnp.float32, -bound, bound)
        return w, b

    w1, b1 = lin(ks[0], ks[1], input_dims, fc1)
    w2, b2 = lin(ks[2], ks[3], fc1, fc2)
    wv, bv = lin(ks[4], ks[5], fc2, 1)
    return (w1, b1, w2, b2, wv, bv)


def critic_forward_ref_bf16(state, params):
    """Pure-JAX reference mirroring the kernel's bf16-matmul / f32-accum path."""
    w1, b1, w2, b2, wv, bv = params
    bf = jnp.bfloat16
    x = jnp.tanh(jnp.dot(state.astype(bf), w1.astype(bf),
                         preferred_element_type=jnp.float32) + b1)
    x = jnp.tanh(jnp.dot(x.astype(bf), w2.astype(bf),
                         preferred_element_type=jnp.float32) + b2)
    return jnp.dot(x.astype(bf), wv.astype(bf),
                   preferred_element_type=jnp.float32) + bv


def critic_forward_ref_f32(state, params):
    """Full-precision reference of the original module."""
    w1, b1, w2, b2, wv, bv = params
    x = jnp.tanh(state @ w1 + b1)
    x = jnp.tanh(x @ w2 + b2)
    return x @ wv + bv


if __name__ == "__main__":
    key = jax.random.PRNGKey(0)
    k_params, k_state = jax.random.split(key)

    batch, input_dims, fc1, fc2 = 16, 32, 64, 64

    params = init_params(k_params, input_dims, fc1, fc2)
    state = jax.random.normal(k_state, (batch, input_dims), jnp.float32)

    v = critic_forward(state, params)
    jax.block_until_ready(v)
    assert v.shape == (batch, 1)

    # Tight check against a reference that uses the same bf16 matmul path.
    v_bf = critic_forward_ref_bf16(state, params)
    assert jnp.allclose(v, v_bf, atol=5e-3, rtol=5e-3), \
        float(jnp.max(jnp.abs(v - v_bf)))

    # Loose check against the exact f32 PyTorch-equivalent math.
    v_f32 = critic_forward_ref_f32(state, params)
    assert jnp.allclose(v, v_f32, atol=5e-2, rtol=5e-2), \
        float(jnp.max(jnp.abs(v - v_f32)))

    print("KERNEL_OK")
</pallas_src>

<mosaic_0001>
module attributes {stable_mosaic.version = 11 : i64} {
  func.func @_critic_kernel(%arg0: i32, %arg1: memref<16x128xbf16, #tpu.memory_space<vmem>>, %arg2: memref<128x128xbf16, #tpu.memory_space<vmem>>, %arg3: memref<1x128xf32, #tpu.memory_space<vmem>>, %arg4: memref<128x128xbf16, #tpu.memory_space<vmem>>, %arg5: memref<1x128xf32, #tpu.memory_space<vmem>>, %arg6: memref<128x128xbf16, #tpu.memory_space<vmem>>, %arg7: memref<1x128xf32, #tpu.memory_space<vmem>>, %arg8: memref<16x128xf32, #tpu.memory_space<vmem>>) attributes {dimension_semantics = [#tpu.dimension_semantics<parallel>], iteration_bounds = array<i64: 1>, scalar_prefetch = 0 : i64, scratch_operands = 0 : i64, tpu.core_type = #tpu.core_type<tc>, window_params = [{transform_indices = @transform_0, window_bounds = array<i64: 16, 128>}, {pipeline_mode = #tpu.pipeline_mode<synchronous>, transform_indices = @transform_1, window_bounds = array<i64: 128, 128>}, {pipeline_mode = #tpu.pipeline_mode<synchronous>, transform_indices = @transform_2, window_bounds = array<i64: 1, 128>}, {pipeline_mode = #tpu.pipeline_mode<synchronous>, transform_indices = @transform_3, window_bounds = array<i64: 128, 128>}, {pipeline_mode = #tpu.pipeline_mode<synchronous>, transform_indices = @transform_4, window_bounds = array<i64: 1, 128>}, {pipeline_mode = #tpu.pipeline_mode<synchronous>, transform_indices = @transform_5, window_bounds = array<i64: 128, 128>}, {pipeline_mode = #tpu.pipeline_mode<synchronous>, transform_indices = @transform_6, window_bounds = array<i64: 1, 128>}, {transform_indices = @transform_7, window_bounds = array<i64: 16, 128>}]} {
    %c0 = arith.constant 0 : index
    %c0_0 = arith.constant 0 : index
    %0 = vector.load %arg1[%c0, %c0_0] : memref<16x128xbf16, #tpu.memory_space<vmem>>, vector<16x128xbf16>
    %c0_1 = arith.constant 0 : index
    %c0_2 = arith.constant 0 : index
    %1 = vector.load %arg2[%c0_1, %c0_2] : memref<128x128xbf16, #tpu.memory_space<vmem>>, vector<128x128xbf16>
    %cst = arith.constant dense<0.000000e+00> : vector<16x128xf32>
    %2 = tpu.matmul %0, %1, %cst {dimension_numbers = #tpu.dot_dimension_numbers<[1], [0], [0], [1], [0, 0, 1, 1], [], []>} : vector<16x128xbf16>, vector<128x128xbf16>, vector<16x128xf32> -> vector<16x128xf32>
    %c0_3 = arith.constant 0 : index
    %c0_4 = arith.constant 0 : index
    %3 = vector.load %arg3[%c0_3, %c0_4] : memref<1x128xf32, #tpu.memory_space<vmem>>, vector<1x128xf32>
    %4 = vector.broadcast %3 : vector<1x128xf32> to vector<16x128xf32>
    %5 = arith.addf %2, %4 : vector<16x128xf32>
    %6 = math.tanh %5 : vector<16x128xf32>
    %7 = arith.truncf %6 : vector<16x128xf32> to vector<16x128xbf16>
    %c0_5 = arith.constant 0 : index
    %c0_6 = arith.constant 0 : index
    %8 = vector.load %arg4[%c0_5, %c0_6] : memref<128x128xbf16, #tpu.memory_space<vmem>>, vector<128x128xbf16>
    %cst_7 = arith.constant dense<0.000000e+00> : vector<16x128xf32>
    %9 = tpu.matmul %7, %8, %cst_7 {dimension_numbers = #tpu.dot_dimension_numbers<[1], [0], [0], [1], [0, 0, 1, 1], [], []>} : vector<16x128xbf16>, vector<128x128xbf16>, vector<16x128xf32> -> vector<16x128xf32>
    %c0_8 = arith.constant 0 : index
    %c0_9 = arith.constant 0 : index
    %10 = vector.load %arg5[%c0_8, %c0_9] : memref<1x128xf32, #tpu.memory_space<vmem>>, vector<1x128xf32>
    %11 = vector.broadcast %10 : vector<1x128xf32> to vector<16x128xf32>
    %12 = arith.addf %9, %11 : vector<16x128xf32>
    %13 = math.tanh %12 : vector<16x128xf32>
    %14 = arith.truncf %13 : vector<16x128xf32> to vector<16x128xbf16>
    %c0_10 = arith.constant 0 : index
    %c0_11 = arith.constant 0 : index
    %15 = vector.load %arg6[%c0_10, %c0_11] : memref<128x128xbf16, #tpu.memory_space<vmem>>, vector<128x128xbf16>
    %cst_12 = arith.constant dense<0.000000e+00> : vector<16x128xf32>
    %16 = tpu.matmul %14, %15, %cst_12 {dimension_numbers = #tpu.dot_dimension_numbers<[1], [0], [0], [1], [0, 0, 1, 1], [], []>} : vector<16x128xbf16>, vector<128x128xbf16>, vector<16x128xf32> -> vector<16x128xf32>
    %c0_13 = arith.constant 0 : index
    %c0_14 = arith.constant 0 : index
    %17 = vector.load %arg7[%c0_13, %c0_14] : memref<1x128xf32, #tpu.memory_space<vmem>>, vector<1x128xf32>
    %18 = vector.broadcast %17 : vector<1x128xf32> to vector<16x128xf32>
    %19 = arith.addf %16, %18 : vector<16x128xf32>
    %c0_15 = arith.constant 0 : index
    %c0_16 = arith.constant 0 : index
    %20 = vector.load %arg8[%c0_15, %c0_16] : memref<16x128xf32, #tpu.memory_space<vmem>>, vector<16x128xf32>
    tpu.vector_store %arg8[%c0_15, %c0_16], %19 {strides = array<i32>} : memref<16x128xf32, #tpu.memory_space<vmem>>, vector<16x128xf32>,
    return
  }
  func.func @transform_0(%arg0: i32) -> (i32, i32) {
    %c0_i32 = arith.constant 0 : i32
    %c0_i32_0 = arith.constant 0 : i32
    return %arg0, %c0_i32 : i32, i32
  }
  func.func @transform_1(%arg0: i32) -> (i32, i32) {
    %c0_i32 = arith.constant 0 : i32
    %c0_i32_0 = arith.constant 0 : i32
    %c0_i32_1 = arith.constant 0 : i32
    return %c0_i32, %c0_i32_0 : i32, i32
  }
  func.func @transform_2(%arg0: i32) -> (i32, i32) {
    %c0_i32 = arith.constant 0 : i32
    %c0_i32_0 = arith.constant 0 : i32
    %c0_i32_1 = arith.constant 0 : i32
    return %c0_i32, %c0_i32_0 : i32, i32
  }
  func.func @transform_3(%arg0: i32) -> (i32, i32) {
    %c0_i32 = arith.constant 0 : i32
    %c0_i32_0 = arith.constant 0 : i32
    %c0_i32_1 = arith.constant 0 : i32
    return %c0_i32, %c0_i32_0 : i32, i32
  }
  func.func @transform_4(%arg0: i32) -> (i32, i32) {
    %c0_i32 = arith.constant 0 : i32
    %c0_i32_0 = arith.constant 0 : i32
    %c0_i32_1 = arith.constant 0 : i32
    return %c0_i32, %c0_i32_0 : i32, i32
  }
  func.func @transform_5(%arg0: i32) -> (i32, i32) {
    %c0_i32 = arith.constant 0 : i32
    %c0_i32_0 = arith.constant 0 : i32
    %c0_i32_1 = arith.constant 0 : i32
    return %c0_i32, %c0_i32_0 : i32, i32
  }
  func.func @transform_6(%arg0: i32) -> (i32, i32) {
    %c0_i32 = arith.constant 0 : i32
    %c0_i32_0 = arith.constant 0 : i32
    %c0_i32_1 = arith.constant 0 : i32
    return %c0_i32, %c0_i32_0 : i32, i32
  }
  func.func @transform_7(%arg0: i32) -> (i32, i32) {
    %c0_i32 = arith.constant 0 : i32
    %c0_i32_0 = arith.constant 0 : i32
    return %arg0, %c0_i32 : i32, i32
  }
}

</mosaic_0001>

<bundles_post_ra>
// kernel: critic_forward.1
= control target key start
LH: loop header
LB: loop body
LE: loop exit
PB: predicated region body
PF: predicated region fallthrough
CT: control target
= control target key end

     0   :  { %v533_v0 = vmov 0.0   ;;  %vm534_vm0 = vmmov 0   ;;  %s695_s1 = inlined_call_operand.vmem [shape: bf16[128,128], index: 1, kind: input, shape index: {}]   ;;  %s696_s3 = inlined_call_operand.vmem [shape: bf16[128,128], index: 3, kind: input, shape index: {}]   ;;  %s697_s0 = inlined_call_operand.vmem [shape: bf16[16,128], index: 0, kind: input, shape index: {}]   ;;  %s698_s5 = inlined_call_operand.vmem [shape: bf16[128,128], index: 5, kind: input, shape index: {}]   ;;  %s699_s2 = inlined_call_operand.vmem [shape: f32[1,128], index: 2, kind: input, shape index: {}]   ;;  %s700_s4 = inlined_call_operand.vmem [shape: f32[1,128], index: 4, kind: input, shape index: {}]   ;;  %s701_s6 = inlined_call_operand.vmem [shape: f32[1,128], index: 6, kind: input, shape index: {}]   ;;  %s702_s7 = inlined_call_operand.vmem [shape: f32[16,128], index: 7, kind: output, shape index: {}]  }
   0x1   :  { %438 = vmatprep.subr.bf16.mxu0 %v533_v0  ;;  %v500_v1 = vld [vmem:[%s695_s1] sm:$0xff]   ;;  %454 = vmatprep.mubr.msk.bf16.mxu0 %vm534_vm0, %v533_v0  ;;  %v501_v2 = vld [vmem:[%s695_s1 + $0x8] sm:$0xff]   ;;  %v502_v3 = vld [vmem:[%s695_s1 + $0x10] sm:$0xff]  }
   0x2   :  { %458 = vmatprep.subr.bf16.mxu1 %v533_v0  ;;  %474 = vmatprep.mubr.msk.bf16.mxu1 %vm534_vm0, %v533_v0  ;;  %v509_v4 = vld [vmem:[%s696_s3] sm:$0xff]   ;;  %v503_v5 = vld [vmem:[%s695_s1 + $0x18] sm:$0xff]   ;;  %v510_v6 = vld [vmem:[%s696_s3 + $0x8] sm:$0xff]  }
   0x3   :  { %439 = vmatpush3.bf16.msra.mxu0 %v500_v1  ;;  %459 = vmatpush3.bf16.msra.mxu1 %v509_v4  ;;  %v504_v7 = vld [vmem:[%s695_s1 + $0x20] sm:$0xff]   ;;  %v511_v8 = vld [vmem:[%s696_s3 + $0x10] sm:$0xff]   ;;  %v505_v9 = vld [vmem:[%s695_s1 + $0x28] sm:$0xff]  }
   0x4   :  { %440 = vmatprep.subr.bf16.mxu0 %v533_v0  ;;  %460 = vmatprep.subr.bf16.mxu1 %v533_v0  ;;  %v512_v10 = vld [vmem:[%s696_s3 + $0x18] sm:$0xff]   ;;  %v506_v11 = vld [vmem:[%s695_s1 + $0x30] sm:$0xff]   ;;  %v508_v13 = vld [vmem:[%s697_s0] sm:$0xff]  }
   0x5   :  { %v507_v12 = vld [vmem:[%s695_s1 + $0x38] sm:$0xff]   ;;  %v513_v14 = vld [vmem:[%s696_s3 + $0x20] sm:$0xff]   ;;  %v514_v15 = vld [vmem:[%s696_s3 + $0x28] sm:$0xff]  }
   0x6   :  { %v515_v16 = vld [vmem:[%s696_s3 + $0x30] sm:$0xff]   ;;  %v516_v17 = vld [vmem:[%s696_s3 + $0x38] sm:$0xff]   ;;  %v517_v18 = vld [vmem:[%s698_s5] sm:$0xff]  }
   0x7   :  { %441 = vmatpush3.bf16.msra.mxu0 %v501_v2  ;;  %461 = vmatpush3.bf16.msra.mxu1 %v510_v6  ;;  %v518_v19 = vld [vmem:[%s698_s5 + $0x8] sm:$0xff]   ;;  %v519_v20 = vld [vmem:[%s698_s5 + $0x10] sm:$0xff]   ;;  %v520_v21 = vld [vmem:[%s698_s5 + $0x18] sm:$0xff]  }
   0x8   :  { %442 = vmatprep.subr.bf16.mxu0 %v533_v0  ;;  %462 = vmatprep.subr.bf16.mxu1 %v533_v0  ;;  %v383_v22 = vld [vmem:[%s699_s2] ss:$0 sm:$0xff]  ;;  %v522_v33 = vld [vmem:[%s698_s5 + $0x28] sm:$0xff]   ;;  %v523_v34 = vld [vmem:[%s698_s5 + $0x30] sm:$0xff]  }
   0x9   :  { %v521_v32 = vld [vmem:[%s698_s5 + $0x20] sm:$0xff]   ;;  %v524_v35 = vld [vmem:[%s698_s5 + $0x38] sm:$0xff]  }
   0xa   :  { %v393_v36 = vld [vmem:[%s700_s4] ss:$0 sm:$0xff] }
   0xb   :  { %443 = vmatpush3.bf16.msra.mxu0 %v502_v3  ;;  %463 = vmatpush3.bf16.msra.mxu1 %v511_v8  ;;  %v402_v46 = vld [vmem:[%s701_s6] ss:$0 sm:$0xff] }
   0xc   :  { %444 = vmatprep.subr.bf16.mxu0 %v533_v0  ;;  %464 = vmatprep.subr.bf16.mxu1 %v533_v0 }
   0xf   :  { %445 = vmatpush3.bf16.msra.mxu0 %v503_v5  ;;  %465 = vmatpush3.bf16.msra.mxu1 %v512_v10 }
  0x10   :  { %446 = vmatprep.subr.bf16.mxu0 %v533_v0  ;;  %466 = vmatprep.subr.bf16.mxu1 %v533_v0 }
  0x13   :  { %447 = vmatpush3.bf16.msra.mxu0 %v504_v7  ;;  %467 = vmatpush3.bf16.msra.mxu1 %v513_v14 }
  0x14   :  { %448 = vmatprep.subr.bf16.mxu0 %v533_v0  ;;  %468 = vmatprep.subr.bf16.mxu1 %v533_v0 }
  0x17   :  { %449 = vmatpush3.bf16.msra.mxu0 %v505_v9  ;;  %469 = vmatpush3.bf16.msra.mxu1 %v514_v15 }
  0x18   :  { %450 = vmatprep.subr.bf16.mxu0 %v533_v0  ;;  %470 = vmatprep.subr.bf16.mxu1 %v533_v0 }
  0x1b   :  { %451 = vmatpush3.bf16.msra.mxu0 %v506_v11  ;;  %471 = vmatpush3.bf16.msra.mxu1 %v515_v16 }
  0x1c   :  { %452 = vmatprep.subr.bf16.mxu0 %v533_v0  ;;  %472 = vmatprep.subr.bf16.mxu1 %v533_v0 }
  0x1f   :  { %453 = vmatpush3.bf16.msra.mxu0 %v507_v12  ;;  %473 = vmatpush3.bf16.msra.mxu1 %v516_v17 }
  0x20   :  { %478 = vmatprep.subr.bf16.mxu0 %v533_v0 }
  0x22   :  { %455 = vmatmul.mubr.bf16.vlgmr.msra.gmra.mrb[0].mxu0 %v508_v13 }
  0x23   :  { %494 = vmatprep.mubr.msk.bf16.mxu0 %vm534_vm0, %v533_v0  ;;  %479 = vmatpush3.bf16.msra.mxu0 %v517_v18 }
  0x24   :  { %480 = vmatprep.subr.bf16.mxu0 %v533_v0 }
  0x27   :  { %481 = vmatpush3.bf16.msra.mxu0 %v518_v19 }
  0x28   :  { %482 = vmatprep.subr.bf16.mxu0 %v533_v0 }
  0x2b   :  { %483 = vmatpush3.bf16.msra.mxu0 %v519_v20 }
  0x2c   :  { %484 = vmatprep.subr.bf16.mxu0 %v533_v0 }
  0x2f   :  { %485 = vmatpush3.bf16.msra.mxu0 %v520_v21 }
  0x30   :  { %486 = vmatprep.subr.bf16.mxu0 %v533_v0 }
  0x33   :  { %487 = vmatpush3.bf16.msra.mxu0 %v521_v32 }
  0x34   :  { %488 = vmatprep.subr.bf16.mxu0 %v533_v0 }
  0x37   :  { %489 = vmatpush3.bf16.msra.mxu0 %v522_v33 }
  0x38   :  { %490 = vmatprep.subr.bf16.mxu0 %v533_v0 }
  0x3b   :  { %491 = vmatpush3.bf16.msra.mxu0 %v523_v34 }
  0x3c   :  { %492 = vmatprep.subr.bf16.mxu0 %v533_v0 }
  0x3f   :  { %493 = vmatpush3.bf16.msra.mxu0 %v524_v35 }
  0xf5   :  { %v140_v23 = vpop.f32.mrb[0].mxu0 }
  0xf6   :  { %v141_v24 = vadd.f32 %v383_v22, %v140_v23  ;;  %v456_v25 = vpop.f32.mrb[1].mxu0 }
  0xf7   :  { %v143_v26 = vpop.f32.mrb[2].mxu0 }
  0xf8   :  { %v144_v27 = vadd.f32 %v383_v22, %v143_v26  ;;  %v457_v28 = vpop.f32.mrb[3].mxu0  ;;  %525 = vtanh.f32 %v141_v24 }
  0xfa   :  { %527 = vtanh.f32 %v144_v27 }
 0x102   :  { %v526_v29 = vpop.eup %525 }
 0x104   :  { %v528_v30 = vpop.eup %527 }
 0x105   :  { %v149_v31 = vpack.c.bf16 %v528_v30, %v526_v29 }
 0x107   :  { %475 = vmatmul.mubr.bf16.vlgmr.msra.gmra.mrb[0].mxu1 %v149_v31 }
 0x1da   :  { %v255_v37 = vpop.f32.mrb[0].mxu1 }
 0x1db   :  { %v256_v38 = vadd.f32 %v393_v36, %v255_v37  ;;  %v476_v39 = vpop.f32.mrb[1].mxu1 }
 0x1dc   :  { %v258_v40 = vpop.f32.mrb[2].mxu1 }
 0x1dd   :  { %v259_v41 = vadd.f32 %v393_v36, %v258_v40  ;;  %v477_v42 = vpop.f32.mrb[3].mxu1  ;;  %529 = vtanh.f32 %v256_v38 }
 0x1df   :  { %531 = vtanh.f32 %v259_v41 }
 0x1e7   :  { %v530_v43 = vpop.eup %529 }
 0x1e9   :  { %v532_v44 = vpop.eup %531 }
 0x1ea   :  { %v264_v45 = vpack.c.bf16 %v532_v44, %v530_v43 }
 0x1ec   :  { %495 = vmatmul.mubr.bf16.vlgmr.msra.gmra.mrb[4].mxu0 %v264_v45 }
 0x2bf   :  { %v370_v47 = vpop.f32.mrb[4].mxu0 }
 0x2c0   :  { %v371_v48 = vadd.f32 %v402_v46, %v370_v47  ;;  %v496_v49 = vpop.f32.mrb[5].mxu0 }
 0x2c1   :  { %v373_v50 = vpop.f32.mrb[6].mxu0 }
 0x2c2   :  { %377 = vst [vmem:[%s702_s7] sm:$0xff] %v371_v48  ;;  %v374_v51 = vadd.f32 %v402_v46, %v373_v50  ;;  %v497_v52 = vpop.f32.mrb[7].mxu0 }
 0x2c4   :  { %378 = vst [vmem:[%s702_s7 + $0x8] sm:$0xff] %v374_v51 }

</bundles_post_ra>
